<compile_context>
chip_gen: v5e
topology: v5e:2x2
jax: 0.10.0
libtpu: 0.0.40
codegen_flags: <defaults>
</compile_context>

<pallas_src>
import math
from functools import partial

import jax
import jax.numpy as jnp
from jax import lax
from jax.experimental import pallas as pl
from jax.experimental.pallas import tpu as pltpu


def _decoder_embedding_kernel(ids_ref, emb_ref, pos_ref, *rest, scale,
                              inv_keep, keep_threshold, tile_s, vocab,
                              apply_dropout):
    """One grid step handles a (tile_s, D) token tile of batch row b.

    ids_ref : (B, S) int32 token ids in SMEM (scalar-prefetched)
    emb_ref : (V, D) embedding table, VMEM-resident (constant index_map)
    pos_ref : (S, D) positional table, VMEM-resident (constant index_map)
    rest    : [bits_ref (tile_s, D) int32]  (only when dropout is active),
              out_ref (tile_s, D)
    """
    if apply_dropout:
        bits_ref, out_ref = rest
    else:
        (out_ref,) = rest

    b = pl.program_id(0)
    s0 = pl.program_id(1) * tile_s

    # --- gather this tile's embedding rows from the VMEM-resident table -----
    def gather_row(i, carry):
        tok = jnp.clip(ids_ref[b, s0 + i], 0, vocab - 1)   # guard OOB ids
        out_ref[pl.ds(i, 1), :] = emb_ref[pl.ds(tok, 1), :]
        return carry

    lax.fori_loop(0, tile_s, gather_row, 0)

    # --- vectorised over the whole (tile_s, D) tile --------------------------
    val = (out_ref[...].astype(jnp.float32) * jnp.float32(scale)
           + pos_ref[pl.ds(s0, tile_s), :].astype(jnp.float32))

    if apply_dropout:
        r = bits_ref[...] & jnp.int32(0x7FFFFFFF)           # uniform in [0, 2^31)
        keep = r < jnp.int32(keep_threshold)
        val = jnp.where(keep, val * jnp.float32(inv_keep), jnp.zeros_like(val))

    out_ref[...] = val.astype(out_ref.dtype)


def _pick_seq_tile(seq_len):
    for cand in (512, 256, 128, 64, 32, 16, 8):
        if seq_len % cand == 0:
            return cand
    return seq_len          # full-dim block is always legal


def decoder_embedding(ids, emb_table, pos_table, *, dropout_p, seed,
                      training=True):
    """ids: (B, S) int32; emb_table: (V, D) f32; pos_table: (max_len, D) f32."""
    B, S = ids.shape
    V, D = emb_table.shape
    assert pos_table.shape[0] >= S and pos_table.shape[1] == D
    pos_slice = pos_table[:S]

    apply_dropout = bool(training and dropout_p > 0.0)
    keep_p = 1.0 - float(dropout_p)

    tile_s = _pick_seq_tile(S)
    num_tiles = S // tile_s

    kernel = partial(
        _decoder_embedding_kernel,
        scale=float(math.sqrt(D)),
        inv_keep=(1.0 / keep_p) if keep_p > 0.0 else 0.0,
        keep_threshold=min(int(keep_p * (1 << 31)), (1 << 31) - 1),
        tile_s=tile_s,
        vocab=V,
        apply_dropout=apply_dropout,
    )

    in_specs = [
        # embedding table: one untiled block, constant index -> fetched once,
        # stays VMEM-resident across the whole grid.
        pl.BlockSpec((V, D), lambda b, j, ids_r: (0, 0)),
        # positional table slice: untiled, VMEM-resident, sliced with pl.ds.
        pl.BlockSpec((S, D), lambda b, j, ids_r: (0, 0)),
    ]
    inputs = [emb_table, pos_slice]

    if apply_dropout:
        # Pre-generated random bits (one int32 per output element), streamed
        # in tile-by-tile and thresholded in-kernel with an integer compare.
        bits = jax.random.bits(jax.random.PRNGKey(seed), (B, S, D),
                               dtype=jnp.uint32)
        in_specs.append(
            pl.BlockSpec((None, tile_s, D), lambda b, j, ids_r: (b, j, 0)))
        inputs.append(lax.bitcast_convert_type(bits, jnp.int32))

    grid_spec = pltpu.PrefetchScalarGridSpec(
        num_scalar_prefetch=1,                 # token ids -> SMEM
        grid=(B, num_tiles),
        in_specs=in_specs,
        out_specs=pl.BlockSpec((None, tile_s, D),
                               lambda b, j, ids_r: (b, j, 0)),
    )

    # Raise the scoped-VMEM limit only when the resident tables need it.
    # TODO(synk): fall back to an HBM (memory_space=pl.ANY) manually
    # double-buffered row-gather when V*D*4 exceeds the VMEM budget
    # (especially on v7x with 64 MiB physical VMEM).
    resident_bytes = (V * D + S * D) * emb_table.dtype.itemsize
    vmem_limit = None
    if resident_bytes > 24 * 1024 * 1024:
        vmem_limit = min(resident_bytes + (16 << 20), 100 * 1024 * 1024)

    return pl.pallas_call(
        kernel,
        out_shape=jax.ShapeDtypeStruct((B, S, D), jnp.float32),
        grid_spec=grid_spec,
        compiler_params=pltpu.CompilerParams(
            dimension_semantics=("parallel", "parallel"),
            vmem_limit_bytes=vmem_limit),
    )(ids.astype(jnp.int32), *inputs)


def sinusoidal_pos_encoding(max_len, d_model):
    pos = jnp.arange(max_len, dtype=jnp.float32)[:, None]
    i = jnp.arange(0, d_model, 2, dtype=jnp.float32)[None, :]
    angle = pos / jnp.power(10000.0, i / float(d_model))
    pe = jnp.zeros((max_len, d_model), jnp.float32)
    pe = pe.at[:, 0::2].set(jnp.sin(angle))
    pe = pe.at[:, 1::2].set(jnp.cos(angle))
    return pe


if __name__ == "__main__":
    # Small, deterministic configuration.
    batch, seq_len, dim_model = 2, 8, 32
    vocab_size, max_length = 50, 16
    dropout_p = 0.1

    key = jax.random.PRNGKey(0)
    k_ids, k_emb = jax.random.split(key)

    # token ids, shape (batch, seq)
    x = jax.random.randint(k_ids, (batch, seq_len), 0, vocab_size,
                           dtype=jnp.int32)
    # nn.Embedding weight (vocab_size, dim_model), deterministic init
    emb_table = (jax.random.normal(k_emb, (vocab_size, dim_model),
                                   jnp.float32) * 0.02)
    # positional-encoding buffer (max_length, dim_model)
    pos_table = sinusoidal_pos_encoding(max_length, dim_model)

    # Eval path (no dropout) must match the plain-JAX reference.
    out_eval = decoder_embedding(x, emb_table, pos_table, dropout_p=dropout_p,
                                 seed=0, training=False)
    jax.block_until_ready(out_eval)
    ref = (emb_table[x] * jnp.float32(math.sqrt(dim_model))
           + pos_table[:seq_len][None])
    assert out_eval.shape == (batch, seq_len, dim_model)
    assert out_eval.dtype == jnp.float32
    assert jnp.allclose(out_eval, ref, atol=1e-5, rtol=1e-5)

    # Training path (inverted dropout): entries are 0 or ref / keep_p.
    out_train = decoder_embedding(x, emb_table, pos_table, dropout_p=dropout_p,
                                  seed=0, training=True)
    jax.block_until_ready(out_train)
    assert out_train.shape == (batch, seq_len, dim_model)
    assert out_train.dtype == jnp.float32
    keep_p = 1.0 - dropout_p
    ok = jnp.all((out_train == 0)
                 | (jnp.abs(out_train * keep_p - ref) < 1e-4))
    assert bool(ok)

    print("KERNEL_OK")
</pallas_src>

<mosaic_0001>
module attributes {stable_mosaic.version = 11 : i64} {
  func.func @_decoder_embedding_kernel(%arg0: i32, %arg1: i32, %arg2: memref<2x8xi32, #tpu.memory_space<smem>>, %arg3: memref<50x32xf32, #tpu.memory_space<vmem>>, %arg4: memref<8x32xf32, #tpu.memory_space<vmem>>, %arg5: memref<1x8x32xf32, #tpu.memory_space<vmem>>) attributes {dimension_semantics = [#tpu.dimension_semantics<parallel>, #tpu.dimension_semantics<parallel>], iteration_bounds = array<i64: 2, 1>, scalar_prefetch = 1 : i64, scratch_operands = 0 : i64, tpu.core_type = #tpu.core_type<tc>, window_params = [{pipeline_mode = #tpu.pipeline_mode<synchronous>, transform_indices = @transform_0, window_bounds = array<i64: 50, 32>}, {pipeline_mode = #tpu.pipeline_mode<synchronous>, transform_indices = @transform_1, window_bounds = array<i64: 8, 32>}, {transform_indices = @transform_2, window_bounds = array<i64: 1, 8, 32>}]} {
    %c8_i32 = arith.constant 8 : i32
    %0 = arith.muli %arg1, %c8_i32 : i32
    %c0_i32 = arith.constant 0 : i32
    %c8_i32_0 = arith.constant 8 : i32
    %1 = arith.addi %c0_i32, %c8_i32_0 : i32
    %c1_i32 = arith.constant 1 : i32
    scf.for %arg6 = %c0_i32 to %1 step %c1_i32  : i32 {
      %12 = arith.addi %0, %arg6 : i32
      %13 = arith.index_cast %arg0 : i32 to index
      %14 = arith.index_cast %12 : i32 to index
      %15 = memref.load %arg2[%13, %14] : memref<2x8xi32, #tpu.memory_space<smem>>
      %c0_i32_8 = arith.constant 0 : i32
      %c49_i32 = arith.constant 49 : i32
      %16 = arith.maxsi %c0_i32_8, %15 : i32
      %17 = arith.minsi %c49_i32, %16 : i32
      %18 = arith.index_cast %17 : i32 to index
      %c0_9 = arith.constant 0 : index
      %19 = vector.load %arg3[%18, %c0_9] : memref<50x32xf32, #tpu.memory_space<vmem>>, vector<1x32xf32>
      %c0_10 = arith.constant 0 : index
      %20 = arith.index_cast %arg6 : i32 to index
      %c0_11 = arith.constant 0 : index
      %21 = vector.load %arg5[%c0_10, %20, %c0_11] : memref<1x8x32xf32, #tpu.memory_space<vmem>>, vector<1x1x32xf32>
      %22 = vector.shape_cast %21 : vector<1x1x32xf32> to vector<1x32xf32>
      %23 = vector.shape_cast %19 : vector<1x32xf32> to vector<1x1x32xf32>
      tpu.vector_store %arg5[%c0_10, %20, %c0_11], %23 {strides = array<i32>} : memref<1x8x32xf32, #tpu.memory_space<vmem>>, vector<1x1x32xf32>,
    }
    %c8_i32_1 = arith.constant 8 : i32
    %c0 = arith.constant 0 : index
    %c0_2 = arith.constant 0 : index
    %c0_3 = arith.constant 0 : index
    %2 = vector.load %arg5[%c0, %c0_2, %c0_3] : memref<1x8x32xf32, #tpu.memory_space<vmem>>, vector<1x8x32xf32>
    %3 = vector.shape_cast %2 : vector<1x8x32xf32> to vector<8x32xf32>
    %cst = arith.constant 5.65685415 : f32
    %4 = vector.broadcast %cst : f32 to vector<8x32xf32>
    %5 = arith.mulf %3, %4 : vector<8x32xf32>
    %6 = arith.index_cast %0 : i32 to index
    %c0_4 = arith.constant 0 : index
    %7 = vector.load %arg4[%6, %c0_4] : memref<8x32xf32, #tpu.memory_space<vmem>>, vector<8x32xf32>
    %8 = arith.addf %5, %7 : vector<8x32xf32>
    %c0_5 = arith.constant 0 : index
    %c0_6 = arith.constant 0 : index
    %c0_7 = arith.constant 0 : index
    %9 = vector.load %arg5[%c0_5, %c0_6, %c0_7] : memref<1x8x32xf32, #tpu.memory_space<vmem>>, vector<1x8x32xf32>
    %10 = vector.shape_cast %9 : vector<1x8x32xf32> to vector<8x32xf32>
    %11 = vector.shape_cast %8 : vector<8x32xf32> to vector<1x8x32xf32>
    tpu.vector_store %arg5[%c0_5, %c0_6, %c0_7], %11 {strides = array<i32>} : memref<1x8x32xf32, #tpu.memory_space<vmem>>, vector<1x8x32xf32>,
    return
  }
  func.func @transform_0(%arg0: i32, %arg1: i32, %arg2: memref<2x8xi32, #tpu.memory_space<smem>>) -> (i32, i32) {
    %c0_i32 = arith.constant 0 : i32
    %c0_i32_0 = arith.constant 0 : i32
    %c0_i32_1 = arith.constant 0 : i32
    return %c0_i32, %c0_i32_0 : i32, i32
  }
  func.func @transform_1(%arg0: i32, %arg1: i32, %arg2: memref<2x8xi32, #tpu.memory_space<smem>>) -> (i32, i32) {
    %c0_i32 = arith.constant 0 : i32
    %c0_i32_0 = arith.constant 0 : i32
    %c0_i32_1 = arith.constant 0 : i32
    return %c0_i32, %c0_i32_0 : i32, i32
  }
  func.func @transform_2(%arg0: i32, %arg1: i32, %arg2: memref<2x8xi32, #tpu.memory_space<smem>>) -> (i32, i32, i32) {
    %c0_i32 = arith.constant 0 : i32
    %c0_i32_0 = arith.constant 0 : i32
    return %arg0, %arg1, %c0_i32 : i32, i32, i32
  }
}

</mosaic_0001>

<bundles_post_ra>
// kernel: tpu_custom_call.1
= control target key start
LH: loop header
LB: loop body
LE: loop exit
PB: predicated region body
PF: predicated region fallthrough
CT: control target
= control target key end

     0   :  { %s442_s15 = smov [#allocation3]   ;;  %s575_s0 = inlined_call_operand.vmem [shape: s32[2,8], index: 0, kind: input, shape index: {}]   ;;  %s576_s1 = inlined_call_operand.vmem [shape: f32[50,32], index: 1, kind: input, shape index: {}]   ;;  %s577_s2 = inlined_call_operand.vmem [shape: f32[8,32], index: 2, kind: input, shape index: {}]   ;;  %s578_s3 = inlined_call_operand.hbm [shape: f32[2,8,32], index: 3, kind: output, shape index: {}]  }
   0x1   :  { %s9_s14 = sshll.u32 %s575_s0, 4  ;;  %s10_s14 = int_to_ptr.vmem [resolvable:$true] %s9_s14 }
   0x2   :  { %12 = dma.vmem_to_smem %s10_s14, 32, %s442_s15, [#allocation2] }
   0x3   :  { %408 = dma.done.wait [#allocation2], 32 }
   0x4   :  { %409 = vsyncadd [#allocation2], 4294967264 }
   0x5   :  { %15 = sfence }
   0x6   :  { %16 = vsyncpa [#allocation5], 0 }
   0x7   :  { %18 = vsyncpa [#allocation5 + $0x1], 0  ;;  %s466_s16 = smov 0   ;;  %s468_s17 = smov 0  }
   0x8   :  { %s470_s18 = smov 0   ;;  %s472_s19 = smov 0  }
   0x9   :  { %s474_s20 = smov 0   ;;  %s476_s21 = smov 0  }
   0xa LB: > { %s259_s0 = sadd.s32 4294967295, %s436_s21   ;;  %s260_s22 = sadd.s32 4294967294, %s436_s21   ;;  %s436_s21 = sphi %s476_s21, %s24_s21   ;;  %s432_s20 = sphi %s474_s20, %s585_s20   ;;  %s428_s19 = sphi %s472_s19, %s584_s19   ;;  %s424_s18 = sphi %s470_s18, %s583_s18   ;;  %s420_s17 = sphi %s468_s17, %s582_s17   ;;  %s416_s16 = sphi %s466_s16, %s581_s16  }
   0xb   : > { %s36_s23 = sadd.s32 1, %s432_s20  ;;  %s87_s24 = sadd.s32 1, %s424_s18 }
   0xc   : > { %p38_p0 = scmp.ge.s32.totalorder %s36_s23, 2  ;;  %p97_p1 = scmp.ne.s32.totalorder %s424_s18, %s420_s17 }
   0xd   : > { %p98_p2 = scmp.eq.s32.totalorder %s259_s0, 1  ;;  %p103_p3 = scmp.ne.s32.totalorder %s420_s17, %s416_s16 }
   0xe   : > { %s587_s23 = smov (%p38_p0, %s36_s23), 0  ;;  %p104_p5 = scmp.eq.s32.totalorder %s260_s22, 1 }
   0xf   : > { %p506_p4 = por %p98_p2, %p97_p1  ;;  %s82_s26 = ssub.s32 %s432_s20, %s587_s23 }
  0x10   : > { %p262_p6 = scmp.ge.s32.totalorder %s436_s21, 1  ;;  %p85_p7 = scmp.eq.s32.totalorder %s82_s26, 0 }
  0x11   : > { %p513_p8 = por %p104_p5, %p103_p3  ;;  %p128_p9 = scmp.lt.s32.totalorder %s436_s21, 3 }
  0x12   : > { %s519_s28 = scalar_select %p85_p7, %s424_s18, %s87_s24  }
  0x13   : > { %p129_p10 = pnand %p262_p6, %p128_p9 }
  0x14   : > { %s142_s29 = sand.u32 (!%p129_p10), 1, %s420_s17   ;;  %s438_s5 = smov (!%p129_p10), 0  }
  0x15   : > { %132 = sbr.rel (%p129_p10) target bundleno = 57 (0x39), region = 28  ;;  %s263_s30 = sshll.u32 (!%p129_p10), %s142_s29, 3 }
  0x16   : > { %s524_s4 = scalar_lea.vmem (!%p129_p10), [#allocation4], %s263_s30 }
  0x1a LB: >> { %s153_s6 = sshra.s32 %s440_s5, 7  ;;  %s158_s7 = sand.u32 127, %s440_s5  ;;  %vm168_vm0 = vcmask 253952   ;;  %s440_s5 = sphi %s438_s5, %s151_s5  }
  0x1b   : >> { %s155_s8 = sadd.s32 %s428_s19, %s153_s6  ;;  %s167_s12 = scalar_lea.vmem %s524_s4, %s440_s5 [#allocation4] }
  0x1c   : >> { %s264_s9 = sshll.u32 %s155_s8, 7  ;;  %s151_s5 = sadd.s32 1, %s440_s5  }
  0x1d   : >> { %s159_s10 = sadd.s32 %s264_s9, %s158_s7  ;;  %p148_p13 = scmp.ge.s32.totalorder %s151_s5, 8  }
  0x1e   : >> { %s160_s11 = sld [smem:[#allocation3 + %s159_s10]]  ;;  %v173_v2 = vld [vmem:[%s577_s2] sm:$0xff] (%p148_p13)  ;;  %s271_s24 = sshll.u32 (%p148_p13), %s428_s19, 3  ;;  %vm175_vm1 = vcmask (%p148_p13), 261120  }
  0x1f   : > { %s189_s6 = scalar_lea.hbm (%p148_p13), %s578_s3, %s271_s24  ;;  %s191_s7 = sshll.u32 (%p148_p13), %s524_s4, 4  ;;  %s192_s7 = int_to_ptr.vmem [resolvable:$true] %s191_s7 }
  0x20   : > { %s193_s5 = sshll.u32 (%p148_p13), %s189_s6, 4  ;;  %s178_s8 = scalar_lea.sflag (%p148_p13), [#allocation5], %s142_s29  ;;  %s194_s5 = int_to_ptr.hbm [resolvable:$true] %s193_s5 }
  0x21   : > { %s366_s9 = sshra.s32 (%p148_p13), %s194_s5, 4  ;;  %s367_s9 = int_to_ptr.hbm [resolvable:$true] %s366_s9 }
  0x22   : > { %s368_s10 = scalar_lea.hbm (%p148_p13), %s367_s9, 8  ;;  %p373_p3 = scmp.lt.s32.totalorder (%p148_p13), %s367_s9, %s578_s3 }
  0x23   : > { %p369_p0 = scmp.ne.s32.totalorder (%p148_p13), %s367_s9, %s368_s10 }
  0x24   : >> { %p161_p11 = scmp.gt.s32.totalorder %s160_s11, 0  ;;  %p265_p12 = scmp.lt.s32.totalorder %s160_s11, 49 }
  0x25   : > { %p370_p1 = pnand (%p148_p13), %p369_p0, %p506_p4 }
  0x26   : >> { %s589_s11 = smov (!%p161_p11, %s160_s11), 0  ;;  %150 = sbr.rel (!%p148_p13) target bundleno = 26 (0x1a), region = 70 }
  0x27   : >> { %s591_s11 = smov (!%p265_p12, %s589_s11), 49  ;;  %p371_p2 = pneg (%p148_p13), %p370_p1 }
  0x28   : >> { %s165_s15 = scalar_lea.vmem %s576_s1, %s591_s11 }
  0x29   : >> { %v166_v0 = vld [vmem:[%s165_s15] sm:$0x1] }
  0x2a   : >> { %169 = vst.msk [vmem:[%s167_s12] sm:$0x1] %vm168_vm0, %v166_v0  ;;  %s372_s12 = scalar_lea.hbm (%p148_p13), %s578_s3, 16 }
  0x2b   : > { %p374_p5 = scmp.lt.s32.totalorder %s372_s12, %s368_s10 }
  0x2d   : > { %p375_p6 = por %p374_p5, %p373_p3 }
  0x2f   : > { %p376_p7 = pnand %p375_p6, %p371_p2 }
  0x31   : > { %v170_v1 = vld [vmem:[%s524_s4] sm:$0xff] }
  0x32   : > { %v171_v3 = vmul.f32 5.656854, %v170_v1 }
  0x34   : > { %v174_v4 = vadd.f32 %v173_v2, %v171_v3 }
  0x36   : > { %176 = vst.msk [vmem:[%s524_s4] sm:$0xff] %vm175_vm1, %v174_v4 }
  0x37   : > { %379 = shalt.err (!%p376_p7)
}
  0x38   : > { %276 = dma.vmem_to_hbm [thread:$0]  (%p506_p4), %s192_s7, 128, %s194_s5, %s178_s8  }
  0x39 PF: > { %p282_p9 = scmp.ge.s32.totalorder %s436_s21, 2  ;;  %s205_s29 = sand.u32 1, %s416_s16  }
  0x3a   : > { %s206_s4 = scalar_lea.sflag [#allocation5], %s205_s29 }
  0x3b   : > { %p279_p10 = pnand %p282_p9, %p513_p8 }
  0x3d   : > { %p280_p11 = pneg %p279_p10 }
  0x3f   : > { %411 = dma.done.wait (%p280_p11), %s206_s4, 128  }
  0x40   : > { %413 = vsyncadd (%p280_p11), %s206_s4, 4294967168  ;;  %s24_s21 = sadd.s32 1, %s436_s21   ;;  %s581_s16 = smov %s420_s17 }
  0x41   : > { %p21_p12 = scmp.ge.s32.totalorder %s24_s21, 4   ;;  %s582_s17 = smov %s424_s18 }
  0x42   : > { %s583_s18 = smov %s519_s28  ;;  %s584_s19 = smov %s432_s20 }
  0x43   : > { %s585_s20 = smov %s587_s23  ;;  %23 = sbr.rel (!%p21_p12) target bundleno = 10 (0xa), region = 81 }
  0x48   :  { %212 = vsyncpa [#allocation5], 1 }
  0x49   :  { %214 = vsyncpa [#allocation5 + $0x1], 1 }

</bundles_post_ra>
